<compile_context>
chip_gen: v7x
topology: tpu7x:2x2x1
jax: 0.10.0
libtpu: 0.0.40
codegen_flags: <defaults>
</compile_context>

<pallas_src>
import functools

import jax
import jax.numpy as jnp
from jax import lax
from jax.experimental import pallas as pl
from jax.experimental.pallas import tpu as pltpu


def _round_up(x: int, m: int) -> int:
    return ((x + m - 1) // m) * m


def _pow2_tile(n_pad: int, target: int) -> int:
    """Largest power-of-two multiple of 128 that is <= target and divides n_pad."""
    t = 128
    while t * 2 <= target and n_pad % (t * 2) == 0:
        t *= 2
    return t


# ----------------------------- Pallas kernels --------------------------------


def _l2_normalize_kernel(x_ref, o_ref):
    # F.normalize(x, p=2, dim=1): x / max(||x||_2, 1e-12)
    #                           == x * rsqrt(max(sum(x^2), 1e-24))
    # Compute in f32, store bf16 for the MXU.
    x = x_ref[...]
    inv = lax.rsqrt(jnp.maximum(jnp.sum(x * x, axis=-1, keepdims=True),
                                jnp.float32(1e-24)))
    o_ref[...] = (x * inv).astype(o_ref.dtype)


def _circle_kernel(a_ref, c_ref, lr_ref, lc_ref, o_ref,
                   p_acc, q_acc, np_acc, *,
                   gamma: float, margin: float, n_valid: int,
                   tm: int, tn: int, pad: int):
    i = pl.program_id(0)
    j = pl.program_id(1)

    @pl.when(j == 0)
    def _():
        p_acc[...] = jnp.zeros_like(p_acc)
        q_acc[...] = jnp.zeros_like(q_acc)
        np_acc[...] = jnp.zeros_like(np_acc)

    a = a_ref[...]                      # [tm, D] bf16, L2-normalized rows
    c = c_ref[...]                      # [tn, D] bf16, L2-normalized cols (same matrix)

    # sim = a @ c.T without materializing a transpose; bf16 x bf16 -> f32 on the MXU.
    sim = lax.dot_general(a, c,
                          dimension_numbers=(((1,), (1,)), ((), ())),
                          preferred_element_type=jnp.float32)   # [tm, tn] f32

    lr = lr_ref[...]                    # [tm, 1] int32
    lc = lc_ref[...]                    # [1, tn] int32
    same = lr == lc                     # [tm, tn] bool (label_mat == label_mat.T)

    # Narrow iotas; the compares broadcast (no full [tm,tn] int32 temporaries).
    row_idx = lax.broadcasted_iota(jnp.int32, (tm, 1), 0) + i * tm
    col_idx = lax.broadcasted_iota(jnp.int32, (1, tn), 1) + j * tn

    pos = same & (row_idx != col_idx)   # pos_mask with diagonal zeroed
    neg = jnp.logical_not(same)         # neg_mask (diagonal already excluded)
    if pad:                             # trace-time: only mask padding if it exists
        valid = col_idx < n_valid       # (1, tn) bool
        pos = pos & valid
        neg = neg & valid

    g = jnp.float32(gamma)
    c_pos = jnp.float32(1.0 - margin)
    c_neg = jnp.float32(margin)

    # Single data-dependent exp per element (constant terms added at finalize).
    e = jnp.exp(g * jnp.where(pos, c_pos - sim, sim - c_neg))
    p_contrib = jnp.where(pos, e, 0.0)
    q_contrib = jnp.where(neg, e, 0.0)
    cnt = pos.astype(jnp.float32)

    # Lane-dense partial reduction: fold 128-lane groups with VPU adds; the
    # cross-lane (XLU) reduce to [tm,1] happens only at finalize.
    ngrp = tn // 128
    p_part = p_contrib[:, :128]
    q_part = q_contrib[:, :128]
    c_part = cnt[:, :128]
    for k in range(1, ngrp):
        sl = slice(k * 128, (k + 1) * 128)
        p_part = p_part + p_contrib[:, sl]
        q_part = q_part + q_contrib[:, sl]
        c_part = c_part + cnt[:, sl]
    p_acc[...] += p_part
    q_acc[...] += q_part
    np_acc[...] += c_part

    @pl.when(j == pl.num_programs(1) - 1)
    def _():
        num_pos = jnp.sum(np_acc[...], axis=1, keepdims=True)          # [tm, 1]
        # num_neg = N - (#same-label cols incl. self) = N - num_pos - 1
        num_neg = jnp.float32(n_valid) - num_pos - 1.0
        # Constant contributions of masked-out entries (match PyTorch exactly):
        #   pos side: (N - num_pos) entries contribute exp(gamma*(1-margin))
        #   neg side: (num_pos + 1) entries contribute exp(-gamma*margin)
        e_pos_const = jnp.exp(g * c_pos)
        e_neg_const = jnp.exp(-g * c_neg)
        pos_sum = (jnp.sum(p_acc[...], axis=1, keepdims=True)
                   + (jnp.float32(n_valid) - num_pos) * e_pos_const)
        neg_sum = (jnp.sum(q_acc[...], axis=1, keepdims=True)
                   + (num_pos + 1.0) * e_neg_const)
        o_ref[...] = jnp.log(1.0 +
                             (pos_sum / (num_pos + 1e-8)) *
                             (neg_sum / (num_neg + 1e-8)))


# ------------------------------- Wrapper --------------------------------------


def circle_loss(embeddings, labels, *, margin: float = 0.25, gamma: float = 256.0,
                block_rows: int = 512, block_cols: int = 512):
    """JAX/Pallas equivalent of CircleLoss.forward.

    block_rows / block_cols must be powers of two times 128 (default 512x512:
    bf16 tiles that fit v7x's 64 MiB VMEM comfortably and are fine on v5e/v6e).
    """
    emb = jnp.asarray(embeddings, dtype=jnp.float32)
    lbl = jnp.asarray(labels, dtype=jnp.int32).reshape(-1)
    n, d = emb.shape

    # ---- tile sizing (multiples of 128 that divide the padded N) ----
    n_pad = _round_up(n, 128)
    tm = _pow2_tile(n_pad, block_rows)
    tn = _pow2_tile(n_pad, block_cols)
    # Give the 'parallel' row axis >= 2 tiles when possible (v7x 2-TC megacore).
    if tm > 128 and n_pad // tm < 2:
        tm //= 2
    assert n_pad % tm == 0 and n_pad % tn == 0

    pad = n_pad - n
    if pad:
        emb = jnp.pad(emb, ((0, pad), (0, 0)))
        lbl = jnp.pad(lbl, (0, pad), constant_values=-1)

    # --- prepass: L2-normalize each row once (hoisted out of the N^2 loop),
    #     emitted in bf16 so the main kernel feeds the MXU at native rate. ---
    emb_n = pl.pallas_call(
        _l2_normalize_kernel,
        out_shape=jax.ShapeDtypeStruct((n_pad, d), jnp.bfloat16),
        grid=(n_pad // tm,),
        in_specs=[pl.BlockSpec((tm, d), lambda i: (i, 0))],
        out_specs=pl.BlockSpec((tm, d), lambda i: (i, 0)),
        compiler_params=pltpu.CompilerParams(
            dimension_semantics=("parallel",)),
    )(emb)

    lbl_row = lbl.reshape(n_pad, 1)   # [N,1] row labels
    lbl_col = lbl.reshape(1, n_pad)   # [1,N] col labels

    kernel = functools.partial(_circle_kernel, gamma=float(gamma),
                               margin=float(margin), n_valid=n,
                               tm=tm, tn=tn, pad=pad)

    per_row = pl.pallas_call(
        kernel,
        out_shape=jax.ShapeDtypeStruct((n_pad, 1), jnp.float32),
        grid=(n_pad // tm, n_pad // tn),
        in_specs=[
            pl.BlockSpec((tm, d), lambda i, j: (i, 0)),   # anchor rows   (bf16)
            pl.BlockSpec((tn, d), lambda i, j: (j, 0)),   # contrast cols (bf16, same array)
            pl.BlockSpec((tm, 1), lambda i, j: (i, 0)),   # row labels
            pl.BlockSpec((1, tn), lambda i, j: (0, j)),   # col labels
        ],
        out_specs=pl.BlockSpec((tm, 1), lambda i, j: (i, 0)),
        scratch_shapes=[pltpu.VMEM((tm, 128), jnp.float32)] * 3,
        compiler_params=pltpu.CompilerParams(
            dimension_semantics=("parallel", "arbitrary"),
            vmem_limit_bytes=64 * 1024 * 1024),
    )(emb_n, emb_n, lbl_row, lbl_col)

    # Final scalar mean over the N valid rows (trivial glue).
    return jnp.mean(per_row[:n, 0])


# ----------------------------- Pure-JAX reference ------------------------------


def _circle_loss_ref(embeddings, labels, *, margin=0.25, gamma=256.0):
    emb = jnp.asarray(embeddings, jnp.float32)
    nrm = jnp.sqrt(jnp.sum(emb * emb, axis=1, keepdims=True))
    emb = emb / jnp.maximum(nrm, 1e-12)
    sim = jnp.matmul(emb, emb.T, precision=lax.Precision.HIGHEST)
    lbl = jnp.asarray(labels).reshape(-1)
    n = lbl.shape[0]
    pos_mask = (lbl[:, None] == lbl[None, :]).astype(jnp.float32)
    neg_mask = 1.0 - pos_mask
    pos_mask = pos_mask * (1.0 - jnp.eye(n, dtype=jnp.float32))
    pos_sim = sim * pos_mask
    neg_sim = sim * neg_mask
    pos_e = jnp.exp(-gamma * (pos_sim - (1.0 - margin)))
    neg_e = jnp.exp(gamma * (neg_sim - margin))
    num_pos = pos_mask.sum(1, keepdims=True)
    num_neg = neg_mask.sum(1, keepdims=True)
    loss = jnp.log(1.0 + pos_e.sum(1, keepdims=True) / (num_pos + 1e-8) *
                   (neg_e.sum(1, keepdims=True) / (num_neg + 1e-8)))
    return loss.mean()


if __name__ == "__main__":
    key = jax.random.PRNGKey(0)
    k_emb, k_lbl = jax.random.split(key)

    B, D = 64, 32
    embeddings = jax.random.normal(k_emb, (B, D), dtype=jnp.float32)
    labels = jax.random.randint(k_lbl, (B,), 0, 8)

    # Note: the module's default gamma=256 makes exp() overflow float32 for random
    # embeddings in the PyTorch reference too; use a finite-range gamma for the check.
    margin, gamma = 0.25, 16.0

    loss = jax.block_until_ready(circle_loss(embeddings, labels,
                                             margin=margin, gamma=gamma))
    ref = jax.block_until_ready(_circle_loss_ref(embeddings, labels,
                                                 margin=margin, gamma=gamma))

    assert jnp.isfinite(loss), loss
    # bf16 similarities (amplified by gamma inside the exp) shift the loss by ~1e-3
    # relative; the f32-HIGHEST reference is the ground truth, so allow 1e-2.
    assert jnp.allclose(loss, ref, rtol=1e-2, atol=1e-2), (loss, ref)
    print("KERNEL_OK")
</pallas_src>

<mosaic_0001>
module attributes {stable_mosaic.version = 11 : i64} {
  func.func @_l2_normalize_kernel(%arg0: i32, %arg1: memref<128x32xf32, #tpu.memory_space<vmem>>, %arg2: memref<128x32xbf16, #tpu.memory_space<vmem>>) attributes {dimension_semantics = [#tpu.dimension_semantics<parallel>], iteration_bounds = array<i64: 1>, scalar_prefetch = 0 : i64, scratch_operands = 0 : i64, tpu.core_type = #tpu.core_type<tc>, window_params = [{transform_indices = @transform_0, window_bounds = array<i64: 128, 32>}, {transform_indices = @transform_1, window_bounds = array<i64: 128, 32>}]} {
    %c0 = arith.constant 0 : index
    %c0_0 = arith.constant 0 : index
    %0 = vector.load %arg1[%c0, %c0_0] : memref<128x32xf32, #tpu.memory_space<vmem>>, vector<128x32xf32>
    %1 = arith.mulf %0, %0 : vector<128x32xf32>
    %cst = arith.constant dense<0.000000e+00> : vector<128xf32>
    %2 = vector.multi_reduction <add>, %1, %cst [1] : vector<128x32xf32> to vector<128xf32>
    %3 = vector.shape_cast %2 : vector<128xf32> to vector<128x1xf32>
    %cst_1 = arith.constant 1.000000e-24 : f32
    %4 = vector.broadcast %cst_1 : f32 to vector<128x1xf32>
    %5 = arith.maximumf %3, %4 : vector<128x1xf32>
    %6 = math.rsqrt %5 : vector<128x1xf32>
    %7 = vector.broadcast %6 : vector<128x1xf32> to vector<128x32xf32>
    %8 = arith.mulf %0, %7 : vector<128x32xf32>
    %9 = arith.truncf %8 : vector<128x32xf32> to vector<128x32xbf16>
    %c0_2 = arith.constant 0 : index
    %c0_3 = arith.constant 0 : index
    %10 = vector.load %arg2[%c0_2, %c0_3] : memref<128x32xbf16, #tpu.memory_space<vmem>>, vector<128x32xbf16>
    tpu.vector_store %arg2[%c0_2, %c0_3], %9 {strides = array<i32>} : memref<128x32xbf16, #tpu.memory_space<vmem>>, vector<128x32xbf16>,
    return
  }
  func.func @transform_0(%arg0: i32) -> (i32, i32) {
    %c0_i32 = arith.constant 0 : i32
    %c0_i32_0 = arith.constant 0 : i32
    return %arg0, %c0_i32 : i32, i32
  }
  func.func @transform_1(%arg0: i32) -> (i32, i32) {
    %c0_i32 = arith.constant 0 : i32
    %c0_i32_0 = arith.constant 0 : i32
    return %arg0, %c0_i32 : i32, i32
  }
}

</mosaic_0001>

<bundles_post_ra>
// kernel: tpu_custom_call.1
= control target key start
LH: loop header
LB: loop body
LE: loop exit
PB: predicated region body
PF: predicated region fallthrough
CT: control target
= control target key end

     0   :  { %vm40_vm0 = vcmask 261120   ;;  %vm201_vm1 = vcmask 257024   ;;  %s504_s0 = inlined_call_operand.vmem [shape: f32[128,32], index: 0, kind: input, shape index: {}]   ;;  %s505_s1 = inlined_call_operand.vmem [shape: bf16[128,32], index: 1, kind: output, shape index: {}]  }
   0x1   :  { %v299_v0 = vld [vmem:[%s504_s0 + $0x10] sm:$0xff]  ;;  %v304_v1 = vld [vmem:[%s504_s0] sm:$0xff]  ;;  %v309_v2 = vld [vmem:[%s504_s0 + $0x18] sm:$0xff] }
   0x2   :  { %v26_v3 = vmul.f32 %v299_v0, %v299_v0  ;;  %v24_v4 = vmul.f32 %v304_v1, %v304_v1  ;;  %v27_v5 = vmul.f32 %v309_v2, %v309_v2  ;;  %v320_v6 = vld [vmem:[%s504_s0 + $0x8] sm:$0xff]  ;;  %v332_v9 = vld [vmem:[%s504_s0 + $0x20] sm:$0xff]  ;;  %v345_v16 = vld [vmem:[%s504_s0 + $0x38] sm:$0xff] }
   0x3   :  { %v25_v7 = vmul.f32 %v320_v6, %v320_v6  ;;  %v327_v8 = vld [vmem:[%s504_s0 + $0x28] sm:$0xff]  ;;  %v28_v15 = vmul.f32 %v332_v9, %v332_v9  ;;  %v350_v17 = vld [vmem:[%s504_s0 + $0x30] sm:$0xff]  ;;  %v31_v20 = vmul.f32 %v345_v16, %v345_v16  ;;  %v366_v23 = vld [vmem:[%s504_s0 + $0x40] sm:$0xff] }
   0x4   :  { %v47_v10 = vsel %vm40_vm0, %v26_v3, 0.0  ;;  %v41_v11 = vsel %vm40_vm0, %v24_v4, 0.0  ;;  %v50_v12 = vsel %vm40_vm0, %v27_v5, 0.0  ;;  %v29_v14 = vmul.f32 %v327_v8, %v327_v8  ;;  %v361_v22 = vld [vmem:[%s504_s0 + $0x48] sm:$0xff]  ;;  %v377_v28 = vld [vmem:[%s504_s0 + $0x58] sm:$0xff]  ;;  %v382_v29 = vld [vmem:[%s504_s0 + $0x50] sm:$0xff] }
   0x5   :  { %48 = vadd.xlane.f32.xlu1 %v47_v10  ;;  %42 = vadd.xlane.f32.xlu0 %v41_v11  ;;  %v44_v13 = vsel %vm40_vm0, %v25_v7, 0.0  ;;  %v53_v19 = vsel %vm40_vm0, %v28_v15, 0.0  ;;  %v30_v21 = vmul.f32 %v350_v17, %v350_v17  ;;  %v62_v24 = vsel %vm40_vm0, %v31_v20, 0.0  ;;  %v393_v34 = vld [vmem:[%s504_s0 + $0x68] sm:$0xff]  ;;  %v398_v35 = vld [vmem:[%s504_s0 + $0x60] sm:$0xff]  ;;  %v409_v40 = vld [vmem:[%s504_s0 + $0x78] sm:$0xff] }
   0x6   :  { %v56_v18 = vsel %vm40_vm0, %v29_v14, 0.0  ;;  %v33_v26 = vmul.f32 %v361_v22, %v361_v22  ;;  %v32_v27 = vmul.f32 %v366_v23, %v366_v23  ;;  %v35_v32 = vmul.f32 %v377_v28, %v377_v28  ;;  %v414_v41 = vld [vmem:[%s504_s0 + $0x70] sm:$0xff] }
   0x7   :  { %v59_v25 = vsel %vm40_vm0, %v30_v21, 0.0  ;;  %v34_v33 = vmul.f32 %v382_v29, %v382_v29  ;;  %v37_v38 = vmul.f32 %v393_v34, %v393_v34  ;;  %v36_v39 = vmul.f32 %v398_v35, %v398_v35 }
   0x8   :  { %v68_v30 = vsel %vm40_vm0, %v33_v26, 0.0  ;;  %v65_v31 = vsel %vm40_vm0, %v32_v27, 0.0  ;;  %v74_v36 = vsel %vm40_vm0, %v35_v32, 0.0  ;;  %v39_v44 = vmul.f32 %v409_v40, %v409_v40 }
   0x9   :  { %51 = vadd.xlane.f32.xlu1 %v50_v12  ;;  %45 = vadd.xlane.f32.xlu0 %v44_v13  ;;  %v71_v37 = vsel %vm40_vm0, %v34_v33, 0.0  ;;  %v80_v42 = vsel %vm40_vm0, %v37_v38, 0.0  ;;  %v77_v43 = vsel %vm40_vm0, %v36_v39, 0.0  ;;  %v38_v45 = vmul.f32 %v414_v41, %v414_v41 }
   0xa   :  { %v86_v46 = vsel %vm40_vm0, %v39_v44, 0.0 }
   0xb   :  { %v83_v47 = vsel %vm40_vm0, %v38_v45, 0.0 }
   0xd   :  { %57 = vadd.xlane.f32.xlu1 %v56_v18  ;;  %54 = vadd.xlane.f32.xlu0 %v53_v19 }
  0x11   :  { %63 = vadd.xlane.f32.xlu1 %v62_v24  ;;  %60 = vadd.xlane.f32.xlu0 %v59_v25 }
  0x15   :  { %69 = vadd.xlane.f32.xlu1 %v68_v30  ;;  %66 = vadd.xlane.f32.xlu0 %v65_v31 }
  0x19   :  { %75 = vadd.xlane.f32.xlu1 %v74_v36  ;;  %72 = vadd.xlane.f32.xlu0 %v71_v37 }
  0x1d   :  { %81 = vadd.xlane.f32.xlu1 %v80_v42  ;;  %78 = vadd.xlane.f32.xlu0 %v77_v43 }
  0x21   :  { %87 = vadd.xlane.f32.xlu1 %v86_v46  ;;  %84 = vadd.xlane.f32.xlu0 %v83_v47 }
  0x92   :  { %v49_v48 = vpop.xlane.xlu1 %48  ;;  %v43_v49 = vpop.xlane.xlu0 %42 }
  0x93   :  { %v91_v50 = vmax.f32 %v49_v48, 1e-24  ;;  %v89_v51 = vmax.f32 %v43_v49, 1e-24 }
  0x95   :  { %254 = vrsqrt.f32 %v91_v50 }
  0x96   :  { %256 = vrsqrt.f32 %v89_v51  ;;  %v52_v52 = vpop.xlane.xlu1 %51  ;;  %v46_v53 = vpop.xlane.xlu0 %45 }
  0x97   :  { %v92_v54 = vmax.f32 %v52_v52, 1e-24  ;;  %v90_v55 = vmax.f32 %v46_v53, 1e-24 }
  0x99   :  { %258 = vrsqrt.f32 %v92_v54 }
  0x9a   :  { %260 = vrsqrt.f32 %v90_v55  ;;  %v58_v56 = vpop.xlane.xlu1 %57  ;;  %v55_v57 = vpop.xlane.xlu0 %54 }
  0x9b   :  { %v94_v58 = vmax.f32 %v58_v56, 1e-24  ;;  %v93_v59 = vmax.f32 %v55_v57, 1e-24 }
  0x9d   :  { %262 = vrsqrt.f32 %v94_v58 }
  0x9e   :  { %264 = vrsqrt.f32 %v93_v59  ;;  %v64_v60 = vpop.xlane.xlu1 %63  ;;  %v61_v61 = vpop.xlane.xlu0 %60 }
  0x9f   :  { %v255_v62 = vpop.eup %254  ;;  %v96_v63 = vmax.f32 %v64_v60, 1e-24  ;;  %v95_v3 = vmax.f32 %v61_v61, 1e-24 }
  0xa0   :  { %v257_v4 = vpop.eup %256  ;;  %v123_v5 = vmul.f32 %v255_v62, %v299_v0 }
  0xa1   :  { %v121_v7 = vmul.f32 %v257_v4, %v304_v1  ;;  %266 = vrsqrt.f32 %v96_v63 }
  0xa2   :  { %v240_v10 = vpack.c.bf16 %v123_v5, %v123_v5  ;;  %268 = vrsqrt.f32 %v95_v3  ;;  %v70_v11 = vpop.xlane.xlu1 %69  ;;  %v67_v12 = vpop.xlane.xlu0 %66 }
  0xa3   :  { %v259_v13 = vpop.eup %258  ;;  %v238_v14 = vpack.c.bf16 %v121_v7, %v121_v7  ;;  %v98_v15 = vmax.f32 %v70_v11, 1e-24  ;;  %v97_v18 = vmax.f32 %v67_v12, 1e-24 }
  0xa4   :  { %v261_v19 = vpop.eup %260  ;;  %204 = vst.msk [vmem:[%s505_s1 + $0x8] sm:$0xf] %vm201_vm1, %v240_v10  ;;  %v124_v0 = vmul.f32 %v259_v13, %v309_v2 }
  0xa5   :  { %202 = vst.msk [vmem:[%s505_s1] sm:$0xf] %vm201_vm1, %v238_v14  ;;  %v122_v1 = vmul.f32 %v261_v19, %v320_v6  ;;  %270 = vrsqrt.f32 %v98_v15 }
  0xa6   :  { %v241_v20 = vpack.c.bf16 %v124_v0, %v124_v0  ;;  %272 = vrsqrt.f32 %v97_v18  ;;  %v76_v21 = vpop.xlane.xlu1 %75  ;;  %v73_v24 = vpop.xlane.xlu0 %72 }
  0xa7   :  { %v263_v25 = vpop.eup %262  ;;  %v239_v26 = vpack.c.bf16 %v122_v1, %v122_v1  ;;  %v100_v27 = vmax.f32 %v76_v21, 1e-24  ;;  %v99_v30 = vmax.f32 %v73_v24, 1e-24 }
  0xa8   :  { %v265_v31 = vpop.eup %264  ;;  %205 = vst.msk [vmem:[%s505_s1 + $0xc] sm:$0xf] %vm201_vm1, %v241_v20  ;;  %v126_v2 = vmul.f32 %v263_v25, %v327_v8 }
  0xa9   :  { %203 = vst.msk [vmem:[%s505_s1 + $0x4] sm:$0xf] %vm201_vm1, %v239_v26  ;;  %v125_v6 = vmul.f32 %v265_v31, %v332_v9  ;;  %274 = vrsqrt.f32 %v100_v27 }
  0xaa   :  { %v243_v32 = vpack.c.bf16 %v126_v2, %v126_v2  ;;  %276 = vrsqrt.f32 %v99_v30  ;;  %v82_v33 = vpop.xlane.xlu1 %81  ;;  %v79_v36 = vpop.xlane.xlu0 %78 }
  0xab   :  { %v267_v37 = vpop.eup %266  ;;  %v242_v38 = vpack.c.bf16 %v125_v6, %v125_v6  ;;  %v102_v39 = vmax.f32 %v82_v33, 1e-24  ;;  %v101_v42 = vmax.f32 %v79_v36, 1e-24 }
  0xac   :  { %v269_v43 = vpop.eup %268  ;;  %207 = vst.msk [vmem:[%s505_s1 + $0x14] sm:$0xf] %vm201_vm1, %v243_v32  ;;  %v128_v8 = vmul.f32 %v267_v37, %v345_v16 }
  0xad   :  { %206 = vst.msk [vmem:[%s505_s1 + $0x10] sm:$0xf] %vm201_vm1, %v242_v38  ;;  %v127_v9 = vmul.f32 %v269_v43, %v350_v17  ;;  %278 = vrsqrt.f32 %v102_v39 }
  0xae   :  { %v245_v44 = vpack.c.bf16 %v128_v8, %v128_v8  ;;  %280 = vrsqrt.f32 %v101_v42  ;;  %v88_v45 = vpop.xlane.xlu1 %87  ;;  %v85_v46 = vpop.xlane.xlu0 %84 }
  0xaf   :  { %v271_v47 = vpop.eup %270  ;;  %v244_v48 = vpack.c.bf16 %v127_v9, %v127_v9  ;;  %v104_v49 = vmax.f32 %v88_v45, 1e-24  ;;  %v103_v50 = vmax.f32 %v85_v46, 1e-24 }
  0xb0   :  { %v273_v51 = vpop.eup %272  ;;  %209 = vst.msk [vmem:[%s505_s1 + $0x1c] sm:$0xf] %vm201_vm1, %v245_v44  ;;  %v130_v16 = vmul.f32 %v271_v47, %v361_v22 }
  0xb1   :  { %208 = vst.msk [vmem:[%s505_s1 + $0x18] sm:$0xf] %vm201_vm1, %v244_v48  ;;  %v129_v17 = vmul.f32 %v273_v51, %v366_v23  ;;  %282 = vrsqrt.f32 %v104_v49 }
  0xb2   :  { %v247_v52 = vpack.c.bf16 %v130_v16, %v130_v16  ;;  %284 = vrsqrt.f32 %v103_v50 }
  0xb3   :  { %v275_v53 = vpop.eup %274  ;;  %v246_v54 = vpack.c.bf16 %v129_v17, %v129_v17 }
  0xb4   :  { %v277_v55 = vpop.eup %276  ;;  %211 = vst.msk [vmem:[%s505_s1 + $0x24] sm:$0xf] %vm201_vm1, %v247_v52  ;;  %v132_v22 = vmul.f32 %v275_v53, %v377_v28 }
  0xb5   :  { %210 = vst.msk [vmem:[%s505_s1 + $0x20] sm:$0xf] %vm201_vm1, %v246_v54  ;;  %v131_v23 = vmul.f32 %v277_v55, %v382_v29 }
  0xb6   :  { %v249_v56 = vpack.c.bf16 %v132_v22, %v132_v22 }
  0xb7   :  { %v279_v57 = vpop.eup %278  ;;  %v248_v58 = vpack.c.bf16 %v131_v23, %v131_v23 }
  0xb8   :  { %v281_v59 = vpop.eup %280  ;;  %213 = vst.msk [vmem:[%s505_s1 + $0x2c] sm:$0xf] %vm201_vm1, %v249_v56  ;;  %v134_v60 = vmul.f32 %v279_v57, %v393_v34 }
  0xb9   :  { %212 = vst.msk [vmem:[%s505_s1 + $0x28] sm:$0xf] %vm201_vm1, %v248_v58  ;;  %v133_v28 = vmul.f32 %v281_v59, %v398_v35 }
  0xba   :  { %v251_v61 = vpack.c.bf16 %v134_v60, %v134_v60 }
  0xbb   :  { %v283_v29 = vpop.eup %282  ;;  %v250_v62 = vpack.c.bf16 %v133_v28, %v133_v28 }
  0xbc   :  { %v285_v63 = vpop.eup %284  ;;  %215 = vst.msk [vmem:[%s505_s1 + $0x34] sm:$0xf] %vm201_vm1, %v251_v61  ;;  %v136_v3 = vmul.f32 %v283_v29, %v409_v40 }
  0xbd   :  { %214 = vst.msk [vmem:[%s505_s1 + $0x30] sm:$0xf] %vm201_vm1, %v250_v62  ;;  %v135_v34 = vmul.f32 %v285_v63, %v414_v41 }
  0xbe   :  { %v253_v4 = vpack.c.bf16 %v136_v3, %v136_v3 }
  0xbf   :  { %v252_v35 = vpack.c.bf16 %v135_v34, %v135_v34 }
  0xc0   :  { %217 = vst.msk [vmem:[%s505_s1 + $0x3c] sm:$0xf] %vm201_vm1, %v253_v4 }
  0xc1   :  { %216 = vst.msk [vmem:[%s505_s1 + $0x38] sm:$0xf] %vm201_vm1, %v252_v35 }

</bundles_post_ra>
